<compile_context>
chip_gen: v6e
topology: v6e:2x2x1
jax: 0.10.0
libtpu: 0.0.40
codegen_flags: <defaults>
</compile_context>

<pallas_src>
import functools

import jax
import jax.numpy as jnp
from jax.experimental import pallas as pl
from jax.experimental.pallas import tpu as pltpu

_LANE = 128      # lane width (last dim of a vreg)
_SUBLANE = 8     # f32 sublane count


def _round_up(n: int, m: int) -> int:
    return ((n + m - 1) // m) * m


def _fused_mlp_kernel(*refs, n_layers: int):
    """refs = (x_ref, w0, b0, w1, b1, ..., w_{L-1}, b_{L-1}, o_ref).

    x_ref/o_ref are (tm, D) batch tiles; weights (bf16) and biases (f32) are
    full, VMEM-resident blocks.  The activation stays in vregs between layers.
    """
    x_ref, o_ref = refs[0], refs[-1]
    h = x_ref[...].astype(jnp.float32)
    for l in range(n_layers):
        w_ref = refs[1 + 2 * l]          # bf16 [Din_p, Dout_p]
        b_ref = refs[2 + 2 * l]          # f32  [1, Dout_p]
        # bf16 MXU inputs, f32 accumulation.
        y = jnp.dot(h.astype(jnp.bfloat16), w_ref[...],
                    preferred_element_type=jnp.float32)
        y = y + b_ref[...]               # f32 bias add (VPU)
        if l < n_layers - 1:             # ReLU on all but the output layer
            y = jnp.maximum(y, 0.0)
        h = y
    o_ref[...] = h.astype(o_ref.dtype)


def init_linear_params(key, fan_in, fan_out, dtype=jnp.float32):
    """Mirrors torch.nn.Linear default init: U[-1/sqrt(fan_in), 1/sqrt(fan_in)]."""
    kw, kb = jax.random.split(key)
    bound = 1.0 / jnp.sqrt(jnp.asarray(fan_in, dtype))
    # stored already transposed: [fan_in, fan_out] so the kernel does x @ W.T
    w_t = jax.random.uniform(kw, (fan_in, fan_out), dtype, -bound, bound)
    b = jax.random.uniform(kb, (fan_out,), dtype, -bound, bound)
    return w_t, b


def make_mlp_params(key, n_inputs, n_outputs, mlp_width, mlp_depth):
    keys = jax.random.split(key, mlp_depth)
    params = [init_linear_params(keys[0], n_inputs, mlp_width)]       # input layer
    for i in range(mlp_depth - 2):                                    # hidden layers
        params.append(init_linear_params(keys[1 + i], mlp_width, mlp_width))
    params.append(init_linear_params(keys[-1], mlp_width, n_outputs))  # output layer
    return params


def pad_mlp_params(params):
    """Zero-pad each layer's [Din, Dout] weight/bias to lane-dense multiples of
    128.  Weights are stored in bf16 (MXU-native, half the VMEM footprint);
    biases stay f32 so the bias-add stays on the f32 VPU path.  Done once at
    setup, not per forward call."""
    padded = []
    for w_t, b in params:
        di, do = w_t.shape
        dip, dop = _round_up(di, _LANE), _round_up(do, _LANE)
        w_p = (jnp.zeros((dip, dop), jnp.float32)
               .at[:di, :do].set(w_t.astype(jnp.float32))
               .astype(jnp.bfloat16))
        b_p = jnp.zeros((1, dop), jnp.float32).at[0, :do].set(b.astype(jnp.float32))
        padded.append((w_p, b_p))
    return padded


def mlp_forward(padded_params, x, n_outputs):
    """x: [B, Din] -> [B, n_outputs]. Matches MLP.forward with eval-mode dropout."""
    B, Din = x.shape
    n_layers = len(padded_params)

    # Batch tile: 256 rows at scale, otherwise one sublane-padded tile.
    tm = 256 if B >= 256 else _round_up(max(B, _SUBLANE), _SUBLANE)
    Bp = _round_up(B, tm)
    Din_p = padded_params[0][0].shape[0]
    Dout_p = padded_params[-1][0].shape[1]

    # Sublane/lane pad the input activation (zeros are inert for Linear+ReLU;
    # padded rows are sliced off before returning).
    x_p = jnp.zeros((Bp, Din_p), jnp.float32).at[:B, :Din].set(
        x.astype(jnp.float32))

    flat_inputs = [x_p]
    in_specs = [pl.BlockSpec((tm, Din_p), lambda i: (i, 0))]

    flops = 0
    bytes_accessed = x_p.size * 4
    weight_bytes = 0
    max_width = max(Din_p, Dout_p)
    for w_p, b_p in padded_params:
        flat_inputs += [w_p, b_p]
        # Full blocks, constant index_map -> DMA'd once, VMEM-resident.
        in_specs.append(pl.BlockSpec(w_p.shape, lambda i: (0, 0)))
        in_specs.append(pl.BlockSpec(b_p.shape, lambda i: (0, 0)))
        flops += 2 * Bp * w_p.shape[0] * w_p.shape[1]
        weight_bytes += w_p.size * 2 + b_p.size * 4
        max_width = max(max_width, w_p.shape[1])
    bytes_accessed += weight_bytes + Bp * Dout_p * 4

    out_spec = pl.BlockSpec((tm, Dout_p), lambda i: (i, 0))

    # VMEM budget: resident weights + double-buffered in/out tiles + live
    # activation, with ~50% headroom.  Clamped to [16 MiB, 64 MiB] so it is
    # valid on v5e/v6e (128 MiB) and v7x (64 MiB).
    footprint = (weight_bytes
                 + 2 * tm * Din_p * 4
                 + 2 * tm * Dout_p * 4
                 + 2 * tm * max_width * 4)
    vmem_limit = min(max(int(footprint * 1.5), 16 << 20), 64 << 20)

    kernel = functools.partial(_fused_mlp_kernel, n_layers=n_layers)
    out_p = pl.pallas_call(
        kernel,
        out_shape=jax.ShapeDtypeStruct((Bp, Dout_p), jnp.float32),
        grid=(Bp // tm,),
        in_specs=in_specs,
        out_specs=out_spec,
        compiler_params=pltpu.CompilerParams(
            dimension_semantics=("parallel",),
            vmem_limit_bytes=vmem_limit,
        ),
        cost_estimate=pl.CostEstimate(
            flops=flops, transcendentals=0, bytes_accessed=bytes_accessed
        ),
    )(*flat_inputs)
    return out_p[:B, :n_outputs].astype(x.dtype)


def _ref_forward(params, x):
    """Plain-JAX reference with the same bf16-input / f32-accum matmul recipe."""
    h = x.astype(jnp.float32)
    for idx, (w_t, b) in enumerate(params):
        y = jnp.dot(h.astype(jnp.bfloat16), w_t.astype(jnp.bfloat16),
                    preferred_element_type=jnp.float32) + b.astype(jnp.float32)
        if idx < len(params) - 1:
            y = jnp.maximum(y, 0.0)
        h = y
    return h


if __name__ == "__main__":
    # Small shapes consistent with the module's forward.
    batch, n_inputs, n_outputs = 2, 16, 8
    hparams = {"mlp_width": 32, "mlp_depth": 4, "mlp_dropout": 0.0}

    key = jax.random.PRNGKey(0)
    kx, kp = jax.random.split(key)
    x = jax.random.normal(kx, (batch, n_inputs), jnp.float32)

    params = make_mlp_params(
        kp, n_inputs, n_outputs, hparams["mlp_width"], hparams["mlp_depth"]
    )
    padded_params = pad_mlp_params(params)

    fwd = jax.jit(mlp_forward, static_argnums=(2,))
    out = fwd(padded_params, x, n_outputs)
    out = jax.block_until_ready(out)

    ref = _ref_forward(params, x)

    assert out.shape == (batch, n_outputs)
    assert jnp.allclose(out, ref, atol=1e-3, rtol=1e-3), (
        f"max abs err {jnp.max(jnp.abs(out - ref))}")

    print("KERNEL_OK")
</pallas_src>

<mosaic_0001>
module attributes {stable_mosaic.version = 11 : i64} {
  func.func @_fused_mlp_kernel(%arg0: i32, %arg1: memref<8x128xf32, #tpu.memory_space<vmem>>, %arg2: memref<128x128xbf16, #tpu.memory_space<vmem>>, %arg3: memref<1x128xf32, #tpu.memory_space<vmem>>, %arg4: memref<128x128xbf16, #tpu.memory_space<vmem>>, %arg5: memref<1x128xf32, #tpu.memory_space<vmem>>, %arg6: memref<128x128xbf16, #tpu.memory_space<vmem>>, %arg7: memref<1x128xf32, #tpu.memory_space<vmem>>, %arg8: memref<128x128xbf16, #tpu.memory_space<vmem>>, %arg9: memref<1x128xf32, #tpu.memory_space<vmem>>, %arg10: memref<8x128xf32, #tpu.memory_space<vmem>>) attributes {dimension_semantics = [#tpu.dimension_semantics<parallel>], iteration_bounds = array<i64: 1>, scalar_prefetch = 0 : i64, scratch_operands = 0 : i64, tpu.core_type = #tpu.core_type<tc>, window_params = [{transform_indices = @transform_0, window_bounds = array<i64: 8, 128>}, {pipeline_mode = #tpu.pipeline_mode<synchronous>, transform_indices = @transform_1, window_bounds = array<i64: 128, 128>}, {pipeline_mode = #tpu.pipeline_mode<synchronous>, transform_indices = @transform_2, window_bounds = array<i64: 1, 128>}, {pipeline_mode = #tpu.pipeline_mode<synchronous>, transform_indices = @transform_3, window_bounds = array<i64: 128, 128>}, {pipeline_mode = #tpu.pipeline_mode<synchronous>, transform_indices = @transform_4, window_bounds = array<i64: 1, 128>}, {pipeline_mode = #tpu.pipeline_mode<synchronous>, transform_indices = @transform_5, window_bounds = array<i64: 128, 128>}, {pipeline_mode = #tpu.pipeline_mode<synchronous>, transform_indices = @transform_6, window_bounds = array<i64: 1, 128>}, {pipeline_mode = #tpu.pipeline_mode<synchronous>, transform_indices = @transform_7, window_bounds = array<i64: 128, 128>}, {pipeline_mode = #tpu.pipeline_mode<synchronous>, transform_indices = @transform_8, window_bounds = array<i64: 1, 128>}, {transform_indices = @transform_9, window_bounds = array<i64: 8, 128>}]} {
    %c0 = arith.constant 0 : index
    %c0_0 = arith.constant 0 : index
    %0 = vector.load %arg1[%c0, %c0_0] : memref<8x128xf32, #tpu.memory_space<vmem>>, vector<8x128xf32>
    %1 = arith.truncf %0 : vector<8x128xf32> to vector<8x128xbf16>
    %c0_1 = arith.constant 0 : index
    %c0_2 = arith.constant 0 : index
    %2 = vector.load %arg2[%c0_1, %c0_2] : memref<128x128xbf16, #tpu.memory_space<vmem>>, vector<128x128xbf16>
    %cst = arith.constant dense<0.000000e+00> : vector<8x128xf32>
    %3 = tpu.matmul %1, %2, %cst {dimension_numbers = #tpu.dot_dimension_numbers<[1], [0], [0], [1], [0, 0, 1, 1], [], []>} : vector<8x128xbf16>, vector<128x128xbf16>, vector<8x128xf32> -> vector<8x128xf32>
    %c0_3 = arith.constant 0 : index
    %c0_4 = arith.constant 0 : index
    %4 = vector.load %arg3[%c0_3, %c0_4] : memref<1x128xf32, #tpu.memory_space<vmem>>, vector<1x128xf32>
    %5 = vector.broadcast %4 : vector<1x128xf32> to vector<8x128xf32>
    %6 = arith.addf %3, %5 : vector<8x128xf32>
    %cst_5 = arith.constant 0.000000e+00 : f32
    %7 = vector.broadcast %cst_5 : f32 to vector<8x128xf32>
    %8 = arith.maximumf %6, %7 : vector<8x128xf32>
    %9 = arith.truncf %8 : vector<8x128xf32> to vector<8x128xbf16>
    %c0_6 = arith.constant 0 : index
    %c0_7 = arith.constant 0 : index
    %10 = vector.load %arg4[%c0_6, %c0_7] : memref<128x128xbf16, #tpu.memory_space<vmem>>, vector<128x128xbf16>
    %cst_8 = arith.constant dense<0.000000e+00> : vector<8x128xf32>
    %11 = tpu.matmul %9, %10, %cst_8 {dimension_numbers = #tpu.dot_dimension_numbers<[1], [0], [0], [1], [0, 0, 1, 1], [], []>} : vector<8x128xbf16>, vector<128x128xbf16>, vector<8x128xf32> -> vector<8x128xf32>
    %c0_9 = arith.constant 0 : index
    %c0_10 = arith.constant 0 : index
    %12 = vector.load %arg5[%c0_9, %c0_10] : memref<1x128xf32, #tpu.memory_space<vmem>>, vector<1x128xf32>
    %13 = vector.broadcast %12 : vector<1x128xf32> to vector<8x128xf32>
    %14 = arith.addf %11, %13 : vector<8x128xf32>
    %cst_11 = arith.constant 0.000000e+00 : f32
    %15 = vector.broadcast %cst_11 : f32 to vector<8x128xf32>
    %16 = arith.maximumf %14, %15 : vector<8x128xf32>
    %17 = arith.truncf %16 : vector<8x128xf32> to vector<8x128xbf16>
    %c0_12 = arith.constant 0 : index
    %c0_13 = arith.constant 0 : index
    %18 = vector.load %arg6[%c0_12, %c0_13] : memref<128x128xbf16, #tpu.memory_space<vmem>>, vector<128x128xbf16>
    %cst_14 = arith.constant dense<0.000000e+00> : vector<8x128xf32>
    %19 = tpu.matmul %17, %18, %cst_14 {dimension_numbers = #tpu.dot_dimension_numbers<[1], [0], [0], [1], [0, 0, 1, 1], [], []>} : vector<8x128xbf16>, vector<128x128xbf16>, vector<8x128xf32> -> vector<8x128xf32>
    %c0_15 = arith.constant 0 : index
    %c0_16 = arith.constant 0 : index
    %20 = vector.load %arg7[%c0_15, %c0_16] : memref<1x128xf32, #tpu.memory_space<vmem>>, vector<1x128xf32>
    %21 = vector.broadcast %20 : vector<1x128xf32> to vector<8x128xf32>
    %22 = arith.addf %19, %21 : vector<8x128xf32>
    %cst_17 = arith.constant 0.000000e+00 : f32
    %23 = vector.broadcast %cst_17 : f32 to vector<8x128xf32>
    %24 = arith.maximumf %22, %23 : vector<8x128xf32>
    %25 = arith.truncf %24 : vector<8x128xf32> to vector<8x128xbf16>
    %c0_18 = arith.constant 0 : index
    %c0_19 = arith.constant 0 : index
    %26 = vector.load %arg8[%c0_18, %c0_19] : memref<128x128xbf16, #tpu.memory_space<vmem>>, vector<128x128xbf16>
    %cst_20 = arith.constant dense<0.000000e+00> : vector<8x128xf32>
    %27 = tpu.matmul %25, %26, %cst_20 {dimension_numbers = #tpu.dot_dimension_numbers<[1], [0], [0], [1], [0, 0, 1, 1], [], []>} : vector<8x128xbf16>, vector<128x128xbf16>, vector<8x128xf32> -> vector<8x128xf32>
    %c0_21 = arith.constant 0 : index
    %c0_22 = arith.constant 0 : index
    %28 = vector.load %arg9[%c0_21, %c0_22] : memref<1x128xf32, #tpu.memory_space<vmem>>, vector<1x128xf32>
    %29 = vector.broadcast %28 : vector<1x128xf32> to vector<8x128xf32>
    %30 = arith.addf %27, %29 : vector<8x128xf32>
    %c0_23 = arith.constant 0 : index
    %c0_24 = arith.constant 0 : index
    %31 = vector.load %arg10[%c0_23, %c0_24] : memref<8x128xf32, #tpu.memory_space<vmem>>, vector<8x128xf32>
    tpu.vector_store %arg10[%c0_23, %c0_24], %30 {strides = array<i32>} : memref<8x128xf32, #tpu.memory_space<vmem>>, vector<8x128xf32>,
    return
  }
  func.func @transform_0(%arg0: i32) -> (i32, i32) {
    %c0_i32 = arith.constant 0 : i32
    %c0_i32_0 = arith.constant 0 : i32
    return %arg0, %c0_i32 : i32, i32
  }
  func.func @transform_1(%arg0: i32) -> (i32, i32) {
    %c0_i32 = arith.constant 0 : i32
    %c0_i32_0 = arith.constant 0 : i32
    %c0_i32_1 = arith.constant 0 : i32
    return %c0_i32, %c0_i32_0 : i32, i32
  }
  func.func @transform_2(%arg0: i32) -> (i32, i32) {
    %c0_i32 = arith.constant 0 : i32
    %c0_i32_0 = arith.constant 0 : i32
    %c0_i32_1 = arith.constant 0 : i32
    return %c0_i32, %c0_i32_0 : i32, i32
  }
  func.func @transform_3(%arg0: i32) -> (i32, i32) {
    %c0_i32 = arith.constant 0 : i32
    %c0_i32_0 = arith.constant 0 : i32
    %c0_i32_1 = arith.constant 0 : i32
    return %c0_i32, %c0_i32_0 : i32, i32
  }
  func.func @transform_4(%arg0: i32) -> (i32, i32) {
    %c0_i32 = arith.constant 0 : i32
    %c0_i32_0 = arith.constant 0 : i32
    %c0_i32_1 = arith.constant 0 : i32
    return %c0_i32, %c0_i32_0 : i32, i32
  }
  func.func @transform_5(%arg0: i32) -> (i32, i32) {
    %c0_i32 = arith.constant 0 : i32
    %c0_i32_0 = arith.constant 0 : i32
    %c0_i32_1 = arith.constant 0 : i32
    return %c0_i32, %c0_i32_0 : i32, i32
  }
  func.func @transform_6(%arg0: i32) -> (i32, i32) {
    %c0_i32 = arith.constant 0 : i32
    %c0_i32_0 = arith.constant 0 : i32
    %c0_i32_1 = arith.constant 0 : i32
    return %c0_i32, %c0_i32_0 : i32, i32
  }
  func.func @transform_7(%arg0: i32) -> (i32, i32) {
    %c0_i32 = arith.constant 0 : i32
    %c0_i32_0 = arith.constant 0 : i32
    %c0_i32_1 = arith.constant 0 : i32
    return %c0_i32, %c0_i32_0 : i32, i32
  }
  func.func @transform_8(%arg0: i32) -> (i32, i32) {
    %c0_i32 = arith.constant 0 : i32
    %c0_i32_0 = arith.constant 0 : i32
    %c0_i32_1 = arith.constant 0 : i32
    return %c0_i32, %c0_i32_0 : i32, i32
  }
  func.func @transform_9(%arg0: i32) -> (i32, i32) {
    %c0_i32 = arith.constant 0 : i32
    %c0_i32_0 = arith.constant 0 : i32
    return %arg0, %c0_i32 : i32, i32
  }
}

</mosaic_0001>

<bundles_post_ra>
// kernel: mlp_forward.1
= control target key start
LH: loop header
LB: loop body
LE: loop exit
PB: predicated region body
PF: predicated region fallthrough
CT: control target
= control target key end

     0   :  { %14 = vsyncpa [#allocation3], 0  ;;  %s966_s0 = inlined_call_operand.vmem [shape: f32[8,128], index: 0, kind: input, shape index: {}]   ;;  %s967_s1 = inlined_call_operand.hbm [shape: bf16[128,128], index: 1, kind: input, shape index: {}]   ;;  %s968_s2 = inlined_call_operand.vmem [shape: f32[1,128], index: 2, kind: input, shape index: {}]   ;;  %s969_s3 = inlined_call_operand.hbm [shape: bf16[128,128], index: 3, kind: input, shape index: {}]   ;;  %s970_s4 = inlined_call_operand.vmem [shape: f32[1,128], index: 4, kind: input, shape index: {}]   ;;  %s971_s5 = inlined_call_operand.hbm [shape: bf16[128,128], index: 5, kind: input, shape index: {}]   ;;  %s972_s6 = inlined_call_operand.vmem [shape: f32[1,128], index: 6, kind: input, shape index: {}]   ;;  %s973_s7 = inlined_call_operand.hbm [shape: bf16[128,128], index: 7, kind: input, shape index: {}]   ;;  %s974_s8 = inlined_call_operand.vmem [shape: f32[1,128], index: 8, kind: input, shape index: {}]   ;;  %s975_s9 = inlined_call_operand.vmem [shape: f32[8,128], index: 9, kind: output, shape index: {}]  }
   0x1   :  { %15 = vsyncpa [#allocation5], 0 }
   0x2   :  { %16 = vsyncpa [#allocation8], 0  ;;  %s826_s30 = smov [#allocation4]   ;;  %s827_s11 = smov [#allocation2]  }
   0x3   :  { %s38_s10 = sshll.u32 %s826_s30, 4  ;;  %s24_s12 = sshll.u32 %s827_s11, 4  ;;  %s39_s10 = int_to_ptr.vmem [resolvable:$true] %s38_s10  ;;  %s25_s12 = int_to_ptr.vmem [resolvable:$true] %s24_s12 }
   0x4   :  { %s748_s13 = scalar_lea.vmem %s39_s10, 1024  ;;  %p753_p1 = scmp.lt.s32.totalorder %s39_s10, %s39_s10 }
   0x5   :  { %p749_p0 = scmp.ne.s32.totalorder %s39_s10, %s748_s13  ;;  %p754_p2 = scmp.lt.s32.totalorder %s748_s13, %s748_s13 }
   0x7   :  { %p755_p3 = por %p754_p2, %p753_p1 }
   0x9   :  { %p756_p4 = pnand %p755_p3, %p749_p0 }
   0xb   :  { %759 = shalt.err (!%p756_p4)
}
   0xc   :  { %s828_s14 = smov 64   ;;  %s829_s15 = smov 4  }
   0xd   :  { %44 = dma.hbm_to_vmem [thread:$0]  %s969_s3, 1024, %s39_s10, [#allocation5], %s828_s14, %s828_s14, %s829_s15  }
   0xe   :  { %s768_s18 = scalar_lea.vmem %s25_s12, 1024  ;;  %p773_p6 = scmp.lt.s32.totalorder %s25_s12, %s25_s12 }
   0xf   :  { %p769_p5 = scmp.ne.s32.totalorder %s25_s12, %s768_s18  ;;  %p774_p7 = scmp.lt.s32.totalorder %s768_s18, %s768_s18 }
  0x11   :  { %p775_p8 = por %p774_p7, %p773_p6 }
  0x13   :  { %p776_p9 = pnand %p775_p8, %p769_p5 }
  0x15   :  { %779 = shalt.err (!%p776_p9)
}
  0x16   :  { %30 = dma.hbm_to_vmem [thread:$0]  %s967_s1, 1024, %s25_s12, [#allocation3], %s828_s14, %s828_s14, %s829_s15  }
  0x17   :  { %s830_s21 = smov [#allocation6]   ;;  %s831_s23 = smov [#allocation7]  }
  0x18   :  { %s52_s22 = sshll.u32 %s830_s21, 4  ;;  %s66_s24 = sshll.u32 %s831_s23, 4  ;;  %s53_s22 = int_to_ptr.vmem [resolvable:$true] %s52_s22  ;;  %s67_s24 = int_to_ptr.vmem [resolvable:$true] %s66_s24 }
  0x19   :  { %s788_s3 = scalar_lea.vmem %s53_s22, 1024  ;;  %p793_p11 = scmp.lt.s32.totalorder %s53_s22, %s53_s22 }
  0x1a   :  { %p789_p10 = scmp.ne.s32.totalorder %s53_s22, %s788_s3  ;;  %p794_p12 = scmp.lt.s32.totalorder %s788_s3, %s788_s3 }
  0x1c   :  { %p795_p13 = por %p794_p12, %p793_p11 }
  0x1e   :  { %p796_p0 = pnand %p795_p13, %p789_p10 }
  0x20   :  { %799 = shalt.err (!%p796_p0)
}
  0x21   :  { %58 = dma.hbm_to_vmem [thread:$0]  %s971_s5, 1024, %s53_s22, [#allocation5], %s828_s14, %s828_s14, %s829_s15  }
  0x22   :  { %s808_s1 = scalar_lea.vmem %s67_s24, 1024  ;;  %p813_p2 = scmp.lt.s32.totalorder %s67_s24, %s67_s24 }
  0x23   :  { %p809_p1 = scmp.ne.s32.totalorder %s67_s24, %s808_s1  ;;  %p814_p3 = scmp.lt.s32.totalorder %s808_s1, %s808_s1 }
  0x25   :  { %p815_p4 = por %p814_p3, %p813_p2 }
  0x27   :  { %p816_p5 = pnand %p815_p4, %p809_p1 }
  0x29   :  { %819 = shalt.err (!%p816_p5)
}
  0x2a   :  { %72 = dma.hbm_to_vmem [thread:$0]  %s973_s7, 1024, %s67_s24, [#allocation8], %s828_s14, %s828_s14, %s829_s15  }
  0x2b   :  { %820 = dma.done.wait [#allocation3], 1024  }
  0x2c   :  { %821 = vsyncadd [#allocation3], 4294966272 }
  0x2d   :  { %822 = dma.done.wait [#allocation5], 2048  }
  0x2e   :  { %823 = vsyncadd [#allocation5], 4294965248 }
  0x2f   :  { %824 = dma.done.wait [#allocation8], 1024  }
  0x30   :  { %825 = vsyncadd [#allocation8], 4294966272  ;;  %v832_v0 = vmov 0.0   ;;  %vm833_vm0 = vmmov 0   ;;  %v708_v1 = vld [vmem:[#allocation2 + $0x38] sm:$0xff]   ;;  %v709_v2 = vld [vmem:[#allocation2 + $0x30] sm:$0xff]  }
  0x31   :  { %620 = vmatprep.subr.bf16.mxu0 %v832_v0  ;;  %636 = vmatprep.mubr.msk.bf16.mxu0 %vm833_vm0, %v832_v0  ;;  %v710_v3 = vld [vmem:[#allocation2 + $0x28] sm:$0xff]   ;;  %v716_v4 = vld [vmem:[#allocation4 + $0x38] sm:$0xff]   ;;  %v711_v5 = vld [vmem:[#allocation2 + $0x20] sm:$0xff]  }
  0x32   :  { %640 = vmatprep.subr.bf16.mxu1 %v832_v0  ;;  %656 = vmatprep.mubr.msk.bf16.mxu1 %vm833_vm0, %v832_v0  ;;  %v717_v6 = vld [vmem:[#allocation4 + $0x30] sm:$0xff]   ;;  %v712_v7 = vld [vmem:[#allocation2 + $0x18] sm:$0xff]   ;;  %v718_v8 = vld [vmem:[#allocation4 + $0x28] sm:$0xff]  }
  0x33   :  { %621 = vmatpush3.bf16.msra.mxu0 %v708_v1  ;;  %641 = vmatpush3.bf16.msra.mxu1 %v716_v4  ;;  %v713_v9 = vld [vmem:[#allocation2 + $0x10] sm:$0xff]   ;;  %v719_v10 = vld [vmem:[#allocation4 + $0x20] sm:$0xff]   ;;  %v714_v11 = vld [vmem:[#allocation2 + $0x8] sm:$0xff]  }
  0x34   :  { %622 = vmatprep.subr.bf16.mxu0 %v832_v0  ;;  %642 = vmatprep.subr.bf16.mxu1 %v832_v0  ;;  %v720_v12 = vld [vmem:[#allocation4 + $0x18] sm:$0xff]   ;;  %v715_v13 = vld [vmem:[#allocation2] sm:$0xff]   ;;  %v721_v15 = vld [vmem:[#allocation4 + $0x10] sm:$0xff]  }
  0x35   :  { %v88_v14 = vld [vmem:[%s966_s0] sm:$0xff]  ;;  %v722_v17 = vld [vmem:[#allocation4 + $0x8] sm:$0xff]   ;;  %v724_v19 = vld [vmem:[#allocation6 + $0x38] sm:$0xff]  }
  0x36   :  { %v89_v16 = vpack.c.bf16 %v88_v14, %v88_v14  ;;  %v723_v18 = vld [vmem:[#allocation4] sm:$0xff]   ;;  %v725_v20 = vld [vmem:[#allocation6 + $0x30] sm:$0xff]   ;;  %v726_v21 = vld [vmem:[#allocation6 + $0x28] sm:$0xff]  }
  0x37   :  { %623 = vmatpush3.bf16.msra.mxu0 %v709_v2  ;;  %643 = vmatpush3.bf16.msra.mxu1 %v717_v6  ;;  %v727_v22 = vld [vmem:[#allocation6 + $0x20] sm:$0xff]   ;;  %v728_v23 = vld [vmem:[#allocation6 + $0x18] sm:$0xff]   ;;  %v729_v24 = vld [vmem:[#allocation6 + $0x10] sm:$0xff]  }
  0x38   :  { %624 = vmatprep.subr.bf16.mxu0 %v832_v0  ;;  %644 = vmatprep.subr.bf16.mxu1 %v832_v0  ;;  %v548_v25 = vld [vmem:[%s968_s2] ss:$0 sm:$0xff]  ;;  %v730_v33 = vld [vmem:[#allocation6 + $0x8] sm:$0xff]   ;;  %v732_v35 = vld [vmem:[#allocation7 + $0x38] sm:$0xff]  }
  0x39   :  { %v731_v34 = vld [vmem:[#allocation6] sm:$0xff]   ;;  %v733_v36 = vld [vmem:[#allocation7 + $0x30] sm:$0xff]   ;;  %v734_v37 = vld [vmem:[#allocation7 + $0x28] sm:$0xff]  }
  0x3a   :  { %v735_v38 = vld [vmem:[#allocation7 + $0x20] sm:$0xff]   ;;  %v736_v39 = vld [vmem:[#allocation7 + $0x18] sm:$0xff]   ;;  %v737_v40 = vld [vmem:[#allocation7 + $0x10] sm:$0xff]  }
  0x3b   :  { %625 = vmatpush3.bf16.msra.mxu0 %v710_v3  ;;  %645 = vmatpush3.bf16.msra.mxu1 %v718_v8  ;;  %v557_v41 = vld [vmem:[%s970_s4] ss:$0 sm:$0xff]  ;;  %v738_v49 = vld [vmem:[#allocation7 + $0x8] sm:$0xff]  }
  0x3c   :  { %626 = vmatprep.subr.bf16.mxu0 %v832_v0  ;;  %646 = vmatprep.subr.bf16.mxu1 %v832_v0  ;;  %v739_v50 = vld [vmem:[#allocation7] sm:$0xff]  }
  0x3d   :  { %v566_v51 = vld [vmem:[%s972_s6] ss:$0 sm:$0xff] }
  0x3e   :  { %v575_v59 = vld [vmem:[%s974_s8] ss:$0 sm:$0xff] }
  0x3f   :  { %627 = vmatpush3.bf16.msra.mxu0 %v711_v5  ;;  %647 = vmatpush3.bf16.msra.mxu1 %v719_v10 }
  0x40   :  { %628 = vmatprep.subr.bf16.mxu0 %v832_v0  ;;  %648 = vmatprep.subr.bf16.mxu1 %v832_v0 }
  0x43   :  { %629 = vmatpush3.bf16.msra.mxu0 %v712_v7  ;;  %649 = vmatpush3.bf16.msra.mxu1 %v720_v12 }
  0x44   :  { %630 = vmatprep.subr.bf16.mxu0 %v832_v0  ;;  %650 = vmatprep.subr.bf16.mxu1 %v832_v0 }
  0x47   :  { %631 = vmatpush3.bf16.msra.mxu0 %v713_v9  ;;  %651 = vmatpush3.bf16.msra.mxu1 %v721_v15 }
  0x48   :  { %632 = vmatprep.subr.bf16.mxu0 %v832_v0  ;;  %652 = vmatprep.subr.bf16.mxu1 %v832_v0 }
  0x4b   :  { %633 = vmatpush3.bf16.msra.mxu0 %v714_v11  ;;  %653 = vmatpush3.bf16.msra.mxu1 %v722_v17 }
  0x4c   :  { %634 = vmatprep.subr.bf16.mxu0 %v832_v0  ;;  %654 = vmatprep.subr.bf16.mxu1 %v832_v0 }
  0x4f   :  { %635 = vmatpush3.bf16.msra.mxu0 %v715_v13  ;;  %655 = vmatpush3.bf16.msra.mxu1 %v723_v18 }
  0x50   :  { %660 = vmatprep.subr.bf16.mxu0 %v832_v0  ;;  %680 = vmatprep.subr.bf16.mxu1 %v832_v0 }
  0x52   :  { %637 = vmatmul.mubr.bf16.vlgmr.msra.gmra.mxu0 %v89_v16 }
  0x53   :  { %676 = vmatprep.mubr.msk.bf16.mxu0 %vm833_vm0, %v832_v0  ;;  %661 = vmatpush3.bf16.msra.mxu0 %v724_v19 }
  0x54   :  { %662 = vmatprep.subr.bf16.mxu0 %v832_v0 }
  0x57   :  { %663 = vmatpush3.bf16.msra.mxu0 %v725_v20 }
  0x58   :  { %664 = vmatprep.subr.bf16.mxu0 %v832_v0 }
  0x5b   :  { %665 = vmatpush3.bf16.msra.mxu0 %v726_v21 }
  0x5c   :  { %666 = vmatprep.subr.bf16.mxu0 %v832_v0 }
  0x5f   :  { %667 = vmatpush3.bf16.msra.mxu0 %v727_v22 }
  0x60   :  { %668 = vmatprep.subr.bf16.mxu0 %v832_v0 }
  0x63   :  { %669 = vmatpush3.bf16.msra.mxu0 %v728_v23 }
  0x64   :  { %670 = vmatprep.subr.bf16.mxu0 %v832_v0 }
  0x67   :  { %671 = vmatpush3.bf16.msra.mxu0 %v729_v24 }
  0x68   :  { %672 = vmatprep.subr.bf16.mxu0 %v832_v0 }
  0x6b   :  { %673 = vmatpush3.bf16.msra.mxu0 %v730_v33 }
  0x6c   :  { %674 = vmatprep.subr.bf16.mxu0 %v832_v0 }
  0x6f   :  { %675 = vmatpush3.bf16.msra.mxu0 %v731_v34 }
 0x112   :  { %v195_v26 = vpop.f32.mrf.mxu0 }
 0x113   :  { %v196_v27 = vadd.f32 %v548_v25, %v195_v26 }
 0x114   :  { %v638_v28 = vpop.f32.mrf.mxu0 }
 0x115   :  { %v201_v29 = vmax.f32 %v196_v27, 0.0 }
 0x116   :  { %v198_v30 = vpop.f32.mrf.mxu0 }
 0x117   :  { %v202_v31 = vpack.c.bf16 %v201_v29, %v201_v29 }
 0x118   :  { %v639_v32 = vpop.f32.mrf.mxu0 }
 0x119   :  { %657 = vmatmul.mubr.bf16.vlgmr.msra.gmra.mxu1 %v202_v31 }
 0x11a   :  { %696 = vmatprep.mubr.msk.bf16.mxu1 %vm833_vm0, %v832_v0  ;;  %681 = vmatpush3.bf16.msra.mxu1 %v732_v35 }
 0x11b   :  { %682 = vmatprep.subr.bf16.mxu1 %v832_v0 }
 0x11e   :  { %683 = vmatpush3.bf16.msra.mxu1 %v733_v36 }
 0x11f   :  { %684 = vmatprep.subr.bf16.mxu1 %v832_v0 }
 0x122   :  { %685 = vmatpush3.bf16.msra.mxu1 %v734_v37 }
 0x123   :  { %686 = vmatprep.subr.bf16.mxu1 %v832_v0 }
 0x126   :  { %687 = vmatpush3.bf16.msra.mxu1 %v735_v38 }
 0x127   :  { %688 = vmatprep.subr.bf16.mxu1 %v832_v0 }
 0x12a   :  { %689 = vmatpush3.bf16.msra.mxu1 %v736_v39 }
 0x12b   :  { %690 = vmatprep.subr.bf16.mxu1 %v832_v0 }
 0x12e   :  { %691 = vmatpush3.bf16.msra.mxu1 %v737_v40 }
 0x12f   :  { %692 = vmatprep.subr.bf16.mxu1 %v832_v0 }
 0x132   :  { %693 = vmatpush3.bf16.msra.mxu1 %v738_v49 }
 0x133   :  { %694 = vmatprep.subr.bf16.mxu1 %v832_v0 }
 0x136   :  { %695 = vmatpush3.bf16.msra.mxu1 %v739_v50 }
 0x1d9   :  { %v308_v42 = vpop.f32.mrf.mxu1 }
 0x1da   :  { %v309_v43 = vadd.f32 %v557_v41, %v308_v42 }
 0x1db   :  { %v658_v44 = vpop.f32.mrf.mxu1 }
 0x1dc   :  { %v314_v45 = vmax.f32 %v309_v43, 0.0 }
 0x1dd   :  { %v311_v46 = vpop.f32.mrf.mxu1 }
 0x1de   :  { %v315_v47 = vpack.c.bf16 %v314_v45, %v314_v45 }
 0x1df   :  { %v659_v48 = vpop.f32.mrf.mxu1 }
 0x1e0   :  { %677 = vmatmul.mubr.bf16.vlgmr.msra.gmra.mxu0 %v315_v47 }
 0x2a0   :  { %v421_v52 = vpop.f32.mrf.mxu0 }
 0x2a1   :  { %v422_v53 = vadd.f32 %v566_v51, %v421_v52 }
 0x2a2   :  { %v678_v54 = vpop.f32.mrf.mxu0 }
 0x2a3   :  { %v427_v55 = vmax.f32 %v422_v53, 0.0 }
 0x2a4   :  { %v424_v56 = vpop.f32.mrf.mxu0 }
 0x2a5   :  { %v428_v57 = vpack.c.bf16 %v427_v55, %v427_v55 }
 0x2a6   :  { %v679_v58 = vpop.f32.mrf.mxu0 }
 0x2a7   :  { %697 = vmatmul.mubr.bf16.vlgmr.msra.gmra.mxu1 %v428_v57 }
 0x367   :  { %v534_v60 = vpop.f32.mrf.mxu1 }
 0x368   :  { %v535_v61 = vadd.f32 %v575_v59, %v534_v60 }
 0x369   :  { %v698_v62 = vpop.f32.mrf.mxu1 }
 0x36a   :  { %540 = vst [vmem:[%s975_s9] sm:$0xff] %v535_v61 }
 0x36b   :  { %v537_v63 = vpop.f32.mrf.mxu1 }
 0x36d   :  { %v699_v0 = vpop.f32.mrf.mxu1 }
 0x36e   :  { %545 = vsyncpa [#allocation3], 1 }
 0x36f   :  { %546 = vsyncpa [#allocation5], 1 }
 0x370   :  { %547 = vsyncpa [#allocation8], 1 }

</bundles_post_ra>
